<compile_context>
chip_gen: v6e
topology: v6e:2x2x1
jax: 0.10.0
libtpu: 0.0.40
codegen_flags: <defaults>
</compile_context>

<pallas_src>
import functools

import jax
import jax.numpy as jnp
from jax.experimental import pallas as pl
from jax.experimental.pallas import tpu as pltpu


# ----------------------------------------------------------------------------
# Path A: VMEM-staged pipelined copy (short or lane-unaligned L_out).
# ----------------------------------------------------------------------------
def _chomp_vmem_kernel(x_ref, o_ref, *, l_out):
    # Dense, tile-aligned read of the full (tileR, L) block; static lane slice
    # in vregs (VPU has plenty of slack); lane-dense write of (tileR, L_out).
    o_ref[...] = x_ref[:, :l_out]


def _chomp_vmem(x2, l_out, *, target_block_bytes=2 << 20):
    rows, l = x2.shape
    itemsize = x2.dtype.itemsize

    if rows < 8:
        tile_r = rows                      # block == full row dim (allowed)
    else:
        tile_r = (target_block_bytes // max(1, l * itemsize)) // 8 * 8
        tile_r = max(8, min(tile_r, (rows // 8) * 8))   # 8-aligned, <= rows

    grid = pl.cdiv(rows, tile_r)
    return pl.pallas_call(
        functools.partial(_chomp_vmem_kernel, l_out=l_out),
        out_shape=jax.ShapeDtypeStruct((rows, l_out), x2.dtype),
        grid=(grid,),
        in_specs=[pl.BlockSpec((tile_r, l), lambda i: (i, 0))],
        out_specs=pl.BlockSpec((tile_r, l_out), lambda i: (i, 0)),
        compiler_params=pltpu.CompilerParams(
            dimension_semantics=("parallel",)),
    )(x2)


# ----------------------------------------------------------------------------
# Path B: DMA-only HBM->HBM strided copy (lane-aligned, long enough L_out).
# ----------------------------------------------------------------------------
def _chomp_dma_kernel(x_hbm, o_hbm, sem, *, row_starts, row_sizes, l_out):
    """Copy x_hbm[r0:r0+nr, :l_out] -> o_hbm[r0:r0+nr, :] per row chunk.

    All chunk DMAs are issued first (kept in flight concurrently), then
    waited on, so the HBM->HBM streams overlap.
    """
    copies = []
    for i, (r0, nr) in enumerate(zip(row_starts, row_sizes)):
        cp = pltpu.make_async_copy(
            x_hbm.at[pl.ds(r0, nr), pl.ds(0, l_out)],   # strided read: skip tail
            o_hbm.at[pl.ds(r0, nr), pl.ds(0, l_out)],   # dense write
            sem.at[i],
        )
        cp.start()
        copies.append(cp)
    for cp in copies:
        cp.wait()


def _chomp_dma(x2, l_out, *, max_inflight_dmas=8, target_chunk_bytes=1 << 20):
    rows, l = x2.shape
    itemsize = x2.dtype.itemsize

    # Rows per ~1 MiB of OUTPUT bytes, rounded up to the 8-row sublane tile so
    # every chunk boundary lands on whole (8,128) HBM tiles.
    rpc = -(-target_chunk_bytes // max(1, l_out * itemsize))
    rpc = max(8, ((rpc + 7) // 8) * 8)
    k = max(1, min(max_inflight_dmas, -(-rows // rpc)))
    # Re-balance to k chunks, all but possibly the last 8-aligned and equal.
    rpc = ((-(-rows // k) + 7) // 8) * 8

    row_starts, row_sizes = [], []
    r = 0
    while r < rows:
        nr = min(rpc, rows - r)
        row_starts.append(r)
        row_sizes.append(nr)
        r += nr
    k = len(row_starts)

    kernel = functools.partial(
        _chomp_dma_kernel,
        row_starts=tuple(row_starts),
        row_sizes=tuple(row_sizes),
        l_out=l_out,
    )
    return pl.pallas_call(
        kernel,
        out_shape=jax.ShapeDtypeStruct((rows, l_out), x2.dtype),
        in_specs=[pl.BlockSpec(memory_space=pl.ANY)],   # raw HBM ref
        out_specs=pl.BlockSpec(memory_space=pl.ANY),    # raw HBM ref
        scratch_shapes=[pltpu.SemaphoreType.DMA((k,))],
    )(x2)


# ----------------------------------------------------------------------------
# Public wrapper — Chomp1d(chomp_size)(x) for x of shape (N, C, L).
# ----------------------------------------------------------------------------
def chomp1d(x: jax.Array, chomp_size: int, *, max_inflight_dmas: int = 8) -> jax.Array:
    assert x.ndim == 3, "expected (N, C, L)"
    n, c, l = x.shape
    # PyTorch's x[:, :, :-0] would be empty; only chomp_size >= 1 is meaningful.
    assert 0 < chomp_size < l, "chomp_size must be in (0, L)"
    l_out = l - chomp_size

    rows = n * c
    if rows == 0:
        return jnp.zeros((n, c, l_out), dtype=x.dtype)

    x2 = x.reshape(rows, l)  # free row-major view for default layouts
    itemsize = x2.dtype.itemsize

    # DMA-only path only when the strided source read stays on whole lane
    # tiles and above HBM burst granularity; otherwise stage through VMEM.
    if (l_out % 128 == 0) and (l_out * itemsize >= 512):
        out2 = _chomp_dma(x2, l_out, max_inflight_dmas=max_inflight_dmas)
    else:
        out2 = _chomp_vmem(x2, l_out)

    return out2.reshape(n, c, l_out)


if __name__ == "__main__":
    key = jax.random.PRNGKey(0)

    # Primary smoke test — short, lane-unaligned L_out (VMEM-staged path).
    N, C, L = 2, 4, 16
    chomp_size = 3  # e.g. (kernel_size - 1) * dilation padding being chomped
    x = jax.random.normal(key, (N, C, L), dtype=jnp.float32)
    out = jax.block_until_ready(chomp1d(x, chomp_size))
    ref = x[:, :, :-chomp_size]
    assert out.shape == (N, C, L - chomp_size), out.shape
    assert out.dtype == x.dtype
    assert jnp.array_equal(out, ref), "VMEM path mismatch vs reference slice"

    # Secondary test — lane-aligned L_out (DMA-only HBM->HBM path).
    N2, C2, L2, chomp2 = 2, 4, 256, 128
    xb = jax.random.normal(jax.random.PRNGKey(0), (N2, C2, L2), dtype=jnp.float32)
    outb = jax.block_until_ready(chomp1d(xb, chomp2))
    assert outb.shape == (N2, C2, L2 - chomp2), outb.shape
    assert jnp.array_equal(outb, xb[:, :, :-chomp2]), "DMA path mismatch vs reference slice"

    print("KERNEL_OK")
</pallas_src>

<mosaic_0001>
module attributes {stable_mosaic.version = 11 : i64} {
  func.func @_chomp_vmem_kernel(%arg0: i32, %arg1: memref<8x16xf32, #tpu.memory_space<vmem>>, %arg2: memref<8x13xf32, #tpu.memory_space<vmem>>) attributes {dimension_semantics = [#tpu.dimension_semantics<parallel>], iteration_bounds = array<i64: 1>, scalar_prefetch = 0 : i64, scratch_operands = 0 : i64, tpu.core_type = #tpu.core_type<tc>, window_params = [{transform_indices = @transform_0, window_bounds = array<i64: 8, 16>}, {transform_indices = @transform_1, window_bounds = array<i64: 8, 13>}]} {
    %c0 = arith.constant 0 : index
    %c0_0 = arith.constant 0 : index
    %0 = vector.load %arg1[%c0, %c0_0] : memref<8x16xf32, #tpu.memory_space<vmem>>, vector<8x13xf32>
    %c0_1 = arith.constant 0 : index
    %c0_2 = arith.constant 0 : index
    %1 = vector.load %arg2[%c0_1, %c0_2] : memref<8x13xf32, #tpu.memory_space<vmem>>, vector<8x13xf32>
    tpu.vector_store %arg2[%c0_1, %c0_2], %0 {strides = array<i32>} : memref<8x13xf32, #tpu.memory_space<vmem>>, vector<8x13xf32>,
    return
  }
  func.func @transform_0(%arg0: i32) -> (i32, i32) {
    %c0_i32 = arith.constant 0 : i32
    %c0_i32_0 = arith.constant 0 : i32
    return %arg0, %c0_i32 : i32, i32
  }
  func.func @transform_1(%arg0: i32) -> (i32, i32) {
    %c0_i32 = arith.constant 0 : i32
    %c0_i32_0 = arith.constant 0 : i32
    return %arg0, %c0_i32 : i32, i32
  }
}

</mosaic_0001>

<bundles_post_ra>
// kernel: tpu_custom_call.1
= control target key start
LH: loop header
LB: loop body
LE: loop exit
PB: predicated region body
PF: predicated region fallthrough
CT: control target
= control target key end

     0   :  { %6 = vsyncpa [#allocation3], 0  ;;  %s103_s0 = inlined_call_operand.hbm [shape: f32[8,16], index: 0, kind: input, shape index: {}]   ;;  %s104_s1 = inlined_call_operand.hbm [shape: f32[8,13], index: 1, kind: output, shape index: {}]  }
   0x1   :  { %7 = vsyncpa [#allocation4], 0  ;;  %s85_s6 = smov [#allocation2]  }
   0x2   :  { %s14_s7 = sshll.u32 %s85_s6, 4  ;;  %s15_s7 = int_to_ptr.vmem [resolvable:$true] %s14_s7 }
   0x3   :  { %s49_s8 = scalar_lea.vmem %s15_s7, 128  ;;  %p54_p1 = scmp.lt.s32.totalorder %s15_s7, %s15_s7 }
   0x4   :  { %p50_p0 = scmp.ne.s32.totalorder %s15_s7, %s49_s8  ;;  %p55_p2 = scmp.lt.s32.totalorder %s49_s8, %s49_s8 }
   0x6   :  { %p56_p3 = por %p55_p2, %p54_p1 }
   0x8   :  { %p57_p4 = pnand %p56_p3, %p50_p0 }
   0xa   :  { %60 = shalt.err (!%p57_p4)
}
   0xb   :  { %17 = dma.hbm_to_vmem [thread:$0]  %s103_s0, 128, %s15_s7, [#allocation3]  }
   0xc   :  { %81 = dma.done.wait [#allocation3], 128  }
   0xd   :  { %82 = vsyncadd [#allocation3], 4294967168  ;;  %s86_s11 = smov [#allocation5]   ;;  %vm22_vm0 = vcmask 105472   ;;  %v21_v0 = vld [vmem:[#allocation2] sm:$0xff] }
   0xe   :  { %s30_s12 = sshll.u32 %s86_s11, 4  ;;  %23 = vst.msk [vmem:[#allocation5] sm:$0xff] %vm22_vm0, %v21_v0  ;;  %s31_s12 = int_to_ptr.vmem [resolvable:$true] %s30_s12 }
   0xf   :  { %s61_s13 = scalar_lea.vmem %s31_s12, 128  ;;  %p66_p6 = scmp.lt.s32.totalorder %s31_s12, %s31_s12 }
  0x10   :  { %p62_p5 = scmp.ne.s32.totalorder %s31_s12, %s61_s13  ;;  %p67_p7 = scmp.lt.s32.totalorder %s61_s13, %s61_s13 }
  0x12   :  { %p68_p8 = por %p67_p7, %p66_p6 }
  0x14   :  { %p69_p9 = pnand %p68_p8, %p62_p5 }
  0x16   :  { %72 = shalt.err (!%p69_p9)
}
  0x17   :  { %33 = dma.vmem_to_hbm [thread:$0]  %s31_s12, 128, %s104_s1, [#allocation4]  }
  0x18   :  { %83 = dma.done.wait [#allocation4], 128  }
  0x19   :  { %84 = vsyncadd [#allocation4], 4294967168 }
  0x1a   :  { %37 = vsyncpa [#allocation3], 1 }
  0x1b   :  { %38 = vsyncpa [#allocation4], 1 }

</bundles_post_ra>
